<compile_context>
chip_gen: v6e
topology: v6e:2x2x1
jax: 0.10.0
libtpu: 0.0.40
codegen_flags: <defaults>
</compile_context>

<pallas_src>
import jax
import jax.numpy as jnp
from jax.experimental import pallas as pl
from jax.experimental.pallas import tpu as pltpu


def _round_up(a, b):
    return (a + b - 1) // b * b


def _lsan_kernel(
    x_ref,        # (TM, in_dim)      token tile                      (compute dtype)
    w1t_ref,      # (in_dim, hidden)  linear_first.weight.T           (compute dtype)
    b1_ref,       # (1, hidden)       linear_first.bias               (f32)
    k2t_ref,      # (hidden, N)       linear_second(nodes).T          (compute dtype)
    nodes_p_ref,  # (N, in_dim)       projection(nodes)               (compute dtype)
    wlab_ref,     # (in_dim, N)       projection2.weight.T @ nodes.T  (compute dtype)
    blab_ref,     # (1, N)            projection2.bias @ nodes.T      (f32)
    vab_ref,      # (2, N)            [nodes_p@wa.T+ba ; nodes_p@wb.T+bb] (f32)
    out_ref,      # (TM, in_dim)      fused output                    (f32)
):
    mm_dt = k2t_ref.dtype          # MXU operand dtype (f32 or bf16)
    x = x_ref[...]

    # --- self-attention branch ---------------------------------------------
    h = jnp.tanh(
        jnp.dot(x, w1t_ref[...], preferred_element_type=jnp.float32) + b1_ref[...]
    )
    s = jnp.dot(h.astype(mm_dt), k2t_ref[...], preferred_element_type=jnp.float32)
    s = s - jnp.max(s, axis=-1, keepdims=True)
    p = jnp.exp(s)
    p = p * pl.reciprocal(jnp.sum(p, axis=-1, keepdims=True), approx=True)
    self_att = jnp.dot(
        p.astype(mm_dt), nodes_p_ref[...], preferred_element_type=jnp.float32
    )

    # --- label-attention branch (projection2 folded with nodes.T in glue) ---
    s2 = jnp.dot(x, wlab_ref[...], preferred_element_type=jnp.float32) + blab_ref[...]
    s2 = s2 - jnp.max(s2, axis=-1, keepdims=True)
    m1 = jnp.exp(s2)
    m1 = m1 * pl.reciprocal(jnp.sum(m1, axis=-1, keepdims=True), approx=True)
    label_att = jnp.dot(
        m1.astype(mm_dt), nodes_p_ref[...], preferred_element_type=jnp.float32
    )

    # --- DynamicWeightedFusion (eval mode), degenerate matmuls folded -------
    # score0 = (p @ nodes_p) @ wa.T + ba == p @ (nodes_p @ wa.T + ba)  (sum(p)=1)
    vab = vab_ref[...]
    score0 = jnp.sum(p * vab[0:1, :], axis=-1, keepdims=True)
    score1 = jnp.sum(m1 * vab[1:2, :], axis=-1, keepdims=True)
    m = jnp.maximum(score0, score1)
    e0 = jnp.exp(score0 - m)
    e1 = jnp.exp(score1 - m)
    inv = pl.reciprocal(e0 + e1, approx=True)
    out_ref[...] = ((e0 * inv) * self_att + (e1 * inv) * label_att).astype(
        out_ref.dtype
    )


def lsan_vocab_forward(x, nodes, params, *, tm=256, compute_dtype=jnp.float32):
    """x: (B, L, in_dim) f32, nodes: (N, node_dim) f32. Returns (B, L, in_dim) f32.

    compute_dtype controls the MXU operand dtype (jnp.bfloat16 recommended on
    v6e/v7x); accumulation and softmax/fusion math are always f32.
    """
    B, L, in_dim = x.shape
    N, node_dim = nodes.shape
    hidden = params["w1"].shape[0]  # linear_first.weight: (hidden, in_dim)

    # -------- glue: tiny node-side projections, done once in f32 ------------
    k2t = (nodes @ params["w2"].T + params["b2"]).T        # (hidden, N)
    nodes_p = nodes @ params["wp"].T + params["bp"]        # (N, in_dim)
    wlab = params["wp2"].T @ nodes.T                       # (in_dim, N)
    blab = (params["bp2"] @ nodes.T)[None, :]              # (1, N)
    va = (nodes_p @ params["wa"].T + params["ba"]).T       # (1, N)
    vb = (nodes_p @ params["wb"].T + params["bb"]).T       # (1, N)
    vab = jnp.concatenate([va, vb], axis=0)                # (2, N)

    cd = compute_dtype
    w1t = params["w1"].T.astype(cd)                        # (in_dim, hidden)
    b1 = params["b1"][None, :].astype(jnp.float32)         # (1, hidden)
    k2t = k2t.astype(cd)
    nodes_p_cd = nodes_p.astype(cd)
    wlab = wlab.astype(cd)

    # -------- row tiling with padding (no divisibility requirement) ---------
    rows = B * L
    tm = _round_up(max(tm, 8), 8)
    tm_eff = min(tm, _round_up(rows, 8))
    rows_p = _round_up(rows, tm_eff)

    xf = x.reshape(rows, in_dim).astype(cd)
    if rows_p != rows:
        xf = jnp.pad(xf, ((0, rows_p - rows), (0, 0)))

    full = lambda i: (0, 0)
    out = pl.pallas_call(
        _lsan_kernel,
        out_shape=jax.ShapeDtypeStruct((rows_p, in_dim), jnp.float32),
        grid=(rows_p // tm_eff,),
        in_specs=[
            pl.BlockSpec((tm_eff, in_dim), lambda i: (i, 0)),   # x tile
            pl.BlockSpec((in_dim, hidden), full),               # w1.T
            pl.BlockSpec((1, hidden), full),                    # b1
            pl.BlockSpec((hidden, N), full),                    # linear_second(nodes).T
            pl.BlockSpec((N, in_dim), full),                    # projection(nodes)
            pl.BlockSpec((in_dim, N), full),                    # wp2.T @ nodes.T
            pl.BlockSpec((1, N), full),                         # bp2 @ nodes.T
            pl.BlockSpec((2, N), full),                         # folded DWF vectors
        ],
        out_specs=pl.BlockSpec((tm_eff, in_dim), lambda i: (i, 0)),
        compiler_params=pltpu.CompilerParams(
            dimension_semantics=("parallel",)
        ),
    )(xf, w1t, b1, k2t, nodes_p_cd, wlab, blab, vab)

    return out[:rows].reshape(B, L, in_dim)


def lsan_vocab_reference(x, nodes, params):
    """Pure-JAX reference mirroring the PyTorch forward (eval mode)."""
    nodes_p = nodes @ params["wp"].T + params["bp"]
    selfatt = jnp.tanh(x @ params["w1"].T + params["b1"])
    k2 = nodes @ params["w2"].T + params["b2"]
    selfatt = jax.nn.softmax(selfatt @ k2.T, axis=-1)
    self_att = selfatt @ nodes_p
    m1 = jax.nn.softmax((x @ params["wp2"].T + params["bp2"]) @ nodes.T, axis=-1)
    label_att = m1 @ nodes_p
    s0 = self_att @ params["wa"].T + params["ba"]
    s1 = label_att @ params["wb"].T + params["bb"]
    w = jax.nn.softmax(jnp.concatenate([s0, s1], axis=-1), axis=-1)
    return w[..., 0:1] * self_att + w[..., 1:2] * label_att


def init_params(key, in_dim, node_dim, hidden):
    ks = jax.random.split(key, 12)
    u = lambda k, shape, fan_in: jax.random.uniform(
        k, shape, jnp.float32, -1.0 / jnp.sqrt(fan_in), 1.0 / jnp.sqrt(fan_in)
    )
    return {
        # linear_first: in_dim -> hidden
        "w1": u(ks[0], (hidden, in_dim), in_dim),
        "b1": u(ks[1], (hidden,), in_dim),
        # linear_second: node_dim -> hidden
        "w2": u(ks[2], (hidden, node_dim), node_dim),
        "b2": u(ks[3], (hidden,), node_dim),
        # projection: node_dim -> in_dim
        "wp": u(ks[4], (in_dim, node_dim), node_dim),
        "bp": u(ks[5], (in_dim,), node_dim),
        # projection2: in_dim -> node_dim
        "wp2": u(ks[6], (node_dim, in_dim), in_dim),
        "bp2": u(ks[7], (node_dim,), in_dim),
        # DynamicWeightedFusion: two Linear(in_dim, 1)
        "wa": u(ks[8], (1, in_dim), in_dim),
        "ba": u(ks[9], (1,), in_dim),
        "wb": u(ks[10], (1, in_dim), in_dim),
        "bb": u(ks[11], (1,), in_dim),
    }


if __name__ == "__main__":
    in_dim = 32      # token embedding dim
    node_dim = 16    # label embedding dim
    hidden = 64      # hidden_features
    N = 24           # number of label nodes

    key = jax.random.PRNGKey(0)
    kx, kn, kp, kx2 = jax.random.split(key, 4)
    nodes = jax.random.normal(kn, (N, node_dim), jnp.float32)
    params = init_params(kp, in_dim, node_dim, hidden)

    # Run 1: small shape (grid=1, tile clamped to the padded row count), f32.
    x_small = jax.random.normal(kx, (2, 8, in_dim), jnp.float32)
    out1 = jax.block_until_ready(lsan_vocab_forward(x_small, nodes, params))
    ref1 = lsan_vocab_reference(x_small, nodes, params)
    assert out1.shape == (2, 8, in_dim)
    assert jnp.allclose(out1, ref1, atol=2e-2, rtol=2e-2), "f32 small mismatch"

    # Run 2: larger shape exercising grid>1 and row padding (400 -> 512), f32.
    x_big = jax.random.normal(kx2, (4, 100, in_dim), jnp.float32)
    out2 = jax.block_until_ready(lsan_vocab_forward(x_big, nodes, params, tm=256))
    ref2 = lsan_vocab_reference(x_big, nodes, params)
    assert out2.shape == (4, 100, in_dim)
    assert jnp.allclose(out2, ref2, atol=2e-2, rtol=2e-2), "f32 tiled mismatch"

    # Run 3: bf16 MXU operands (v6e/v7x recommendation); loose sanity check
    # vs the f32 reference (operand rounding dominates the difference).
    out3 = jax.block_until_ready(
        lsan_vocab_forward(x_big, nodes, params, tm=256, compute_dtype=jnp.bfloat16)
    )
    assert float(jnp.max(jnp.abs(out3 - ref2))) < 0.15, "bf16 sanity check failed"

    print("KERNEL_OK")
</pallas_src>

<mosaic_0001>
module attributes {stable_mosaic.version = 11 : i64} {
  func.func @_lsan_kernel(%arg0: i32, %arg1: memref<16x32xf32, #tpu.memory_space<vmem>>, %arg2: memref<32x64xf32, #tpu.memory_space<vmem>>, %arg3: memref<1x64xf32, #tpu.memory_space<vmem>>, %arg4: memref<64x24xf32, #tpu.memory_space<vmem>>, %arg5: memref<24x32xf32, #tpu.memory_space<vmem>>, %arg6: memref<32x24xf32, #tpu.memory_space<vmem>>, %arg7: memref<1x24xf32, #tpu.memory_space<vmem>>, %arg8: memref<2x24xf32, #tpu.memory_space<vmem>>, %arg9: memref<16x32xf32, #tpu.memory_space<vmem>>) attributes {dimension_semantics = [#tpu.dimension_semantics<parallel>], iteration_bounds = array<i64: 1>, scalar_prefetch = 0 : i64, scratch_operands = 0 : i64, tpu.core_type = #tpu.core_type<tc>, window_params = [{transform_indices = @transform_0, window_bounds = array<i64: 16, 32>}, {pipeline_mode = #tpu.pipeline_mode<synchronous>, transform_indices = @transform_1, window_bounds = array<i64: 32, 64>}, {pipeline_mode = #tpu.pipeline_mode<synchronous>, transform_indices = @transform_2, window_bounds = array<i64: 1, 64>}, {pipeline_mode = #tpu.pipeline_mode<synchronous>, transform_indices = @transform_3, window_bounds = array<i64: 64, 24>}, {pipeline_mode = #tpu.pipeline_mode<synchronous>, transform_indices = @transform_4, window_bounds = array<i64: 24, 32>}, {pipeline_mode = #tpu.pipeline_mode<synchronous>, transform_indices = @transform_5, window_bounds = array<i64: 32, 24>}, {pipeline_mode = #tpu.pipeline_mode<synchronous>, transform_indices = @transform_6, window_bounds = array<i64: 1, 24>}, {pipeline_mode = #tpu.pipeline_mode<synchronous>, transform_indices = @transform_7, window_bounds = array<i64: 2, 24>}, {transform_indices = @transform_8, window_bounds = array<i64: 16, 32>}]} {
    %c0 = arith.constant 0 : index
    %c0_0 = arith.constant 0 : index
    %0 = vector.load %arg1[%c0, %c0_0] : memref<16x32xf32, #tpu.memory_space<vmem>>, vector<16x32xf32>
    %c0_1 = arith.constant 0 : index
    %c0_2 = arith.constant 0 : index
    %1 = vector.load %arg2[%c0_1, %c0_2] : memref<32x64xf32, #tpu.memory_space<vmem>>, vector<32x64xf32>
    %cst = arith.constant dense<0.000000e+00> : vector<16x64xf32>
    %2 = tpu.matmul %0, %1, %cst {dimension_numbers = #tpu.dot_dimension_numbers<[1], [0], [0], [1], [0, 0, 1, 1], [], []>} : vector<16x32xf32>, vector<32x64xf32>, vector<16x64xf32> -> vector<16x64xf32>
    %c0_3 = arith.constant 0 : index
    %c0_4 = arith.constant 0 : index
    %3 = vector.load %arg3[%c0_3, %c0_4] : memref<1x64xf32, #tpu.memory_space<vmem>>, vector<1x64xf32>
    %4 = vector.broadcast %3 : vector<1x64xf32> to vector<16x64xf32>
    %5 = arith.addf %2, %4 : vector<16x64xf32>
    %6 = math.tanh %5 : vector<16x64xf32>
    %c0_5 = arith.constant 0 : index
    %c0_6 = arith.constant 0 : index
    %7 = vector.load %arg4[%c0_5, %c0_6] : memref<64x24xf32, #tpu.memory_space<vmem>>, vector<64x24xf32>
    %cst_7 = arith.constant dense<0.000000e+00> : vector<16x24xf32>
    %8 = tpu.matmul %6, %7, %cst_7 {dimension_numbers = #tpu.dot_dimension_numbers<[1], [0], [0], [1], [0, 0, 1, 1], [], []>} : vector<16x64xf32>, vector<64x24xf32>, vector<16x24xf32> -> vector<16x24xf32>
    %cst_8 = arith.constant dense<0xFF800000> : vector<16xf32>
    %9 = vector.multi_reduction <maximumf>, %8, %cst_8 [1] : vector<16x24xf32> to vector<16xf32>
    %10 = vector.shape_cast %9 : vector<16xf32> to vector<16x1xf32>
    %11 = vector.broadcast %10 : vector<16x1xf32> to vector<16x24xf32>
    %12 = arith.subf %8, %11 : vector<16x24xf32>
    %13 = math.exp %12 : vector<16x24xf32>
    %cst_9 = arith.constant dense<0.000000e+00> : vector<16xf32>
    %14 = vector.multi_reduction <add>, %13, %cst_9 [1] : vector<16x24xf32> to vector<16xf32>
    %15 = vector.shape_cast %14 : vector<16xf32> to vector<16x1xf32>
    %16 = tpu.reciprocal %15 {approx = true} : vector<16x1xf32> -> vector<16x1xf32>
    %17 = vector.broadcast %16 : vector<16x1xf32> to vector<16x24xf32>
    %18 = arith.mulf %13, %17 : vector<16x24xf32>
    %c0_10 = arith.constant 0 : index
    %c0_11 = arith.constant 0 : index
    %19 = vector.load %arg5[%c0_10, %c0_11] : memref<24x32xf32, #tpu.memory_space<vmem>>, vector<24x32xf32>
    %cst_12 = arith.constant dense<0.000000e+00> : vector<16x32xf32>
    %20 = tpu.matmul %18, %19, %cst_12 {dimension_numbers = #tpu.dot_dimension_numbers<[1], [0], [0], [1], [0, 0, 1, 1], [], []>} : vector<16x24xf32>, vector<24x32xf32>, vector<16x32xf32> -> vector<16x32xf32>
    %c0_13 = arith.constant 0 : index
    %c0_14 = arith.constant 0 : index
    %21 = vector.load %arg6[%c0_13, %c0_14] : memref<32x24xf32, #tpu.memory_space<vmem>>, vector<32x24xf32>
    %cst_15 = arith.constant dense<0.000000e+00> : vector<16x24xf32>
    %22 = tpu.matmul %0, %21, %cst_15 {dimension_numbers = #tpu.dot_dimension_numbers<[1], [0], [0], [1], [0, 0, 1, 1], [], []>} : vector<16x32xf32>, vector<32x24xf32>, vector<16x24xf32> -> vector<16x24xf32>
    %c0_16 = arith.constant 0 : index
    %c0_17 = arith.constant 0 : index
    %23 = vector.load %arg7[%c0_16, %c0_17] : memref<1x24xf32, #tpu.memory_space<vmem>>, vector<1x24xf32>
    %24 = vector.broadcast %23 : vector<1x24xf32> to vector<16x24xf32>
    %25 = arith.addf %22, %24 : vector<16x24xf32>
    %cst_18 = arith.constant dense<0xFF800000> : vector<16xf32>
    %26 = vector.multi_reduction <maximumf>, %25, %cst_18 [1] : vector<16x24xf32> to vector<16xf32>
    %27 = vector.shape_cast %26 : vector<16xf32> to vector<16x1xf32>
    %28 = vector.broadcast %27 : vector<16x1xf32> to vector<16x24xf32>
    %29 = arith.subf %25, %28 : vector<16x24xf32>
    %30 = math.exp %29 : vector<16x24xf32>
    %cst_19 = arith.constant dense<0.000000e+00> : vector<16xf32>
    %31 = vector.multi_reduction <add>, %30, %cst_19 [1] : vector<16x24xf32> to vector<16xf32>
    %32 = vector.shape_cast %31 : vector<16xf32> to vector<16x1xf32>
    %33 = tpu.reciprocal %32 {approx = true} : vector<16x1xf32> -> vector<16x1xf32>
    %34 = vector.broadcast %33 : vector<16x1xf32> to vector<16x24xf32>
    %35 = arith.mulf %30, %34 : vector<16x24xf32>
    %c0_20 = arith.constant 0 : index
    %c0_21 = arith.constant 0 : index
    %36 = vector.load %arg5[%c0_20, %c0_21] : memref<24x32xf32, #tpu.memory_space<vmem>>, vector<24x32xf32>
    %cst_22 = arith.constant dense<0.000000e+00> : vector<16x32xf32>
    %37 = tpu.matmul %35, %36, %cst_22 {dimension_numbers = #tpu.dot_dimension_numbers<[1], [0], [0], [1], [0, 0, 1, 1], [], []>} : vector<16x24xf32>, vector<24x32xf32>, vector<16x32xf32> -> vector<16x32xf32>
    %c0_23 = arith.constant 0 : index
    %c0_24 = arith.constant 0 : index
    %38 = vector.load %arg8[%c0_23, %c0_24] : memref<2x24xf32, #tpu.memory_space<vmem>>, vector<2x24xf32>
    %39 = vector.extract_strided_slice %38 {offsets = [0, 0], sizes = [1, 24], strides = [1, 1]} : vector<2x24xf32> to vector<1x24xf32>
    %40 = vector.broadcast %39 : vector<1x24xf32> to vector<16x24xf32>
    %41 = arith.mulf %18, %40 : vector<16x24xf32>
    %cst_25 = arith.constant dense<0.000000e+00> : vector<16xf32>
    %42 = vector.multi_reduction <add>, %41, %cst_25 [1] : vector<16x24xf32> to vector<16xf32>
    %43 = vector.shape_cast %42 : vector<16xf32> to vector<16x1xf32>
    %44 = vector.extract_strided_slice %38 {offsets = [1, 0], sizes = [1, 24], strides = [1, 1]} : vector<2x24xf32> to vector<1x24xf32>
    %45 = vector.broadcast %44 : vector<1x24xf32> to vector<16x24xf32>
    %46 = arith.mulf %35, %45 : vector<16x24xf32>
    %cst_26 = arith.constant dense<0.000000e+00> : vector<16xf32>
    %47 = vector.multi_reduction <add>, %46, %cst_26 [1] : vector<16x24xf32> to vector<16xf32>
    %48 = vector.shape_cast %47 : vector<16xf32> to vector<16x1xf32>
    %49 = arith.maximumf %43, %48 : vector<16x1xf32>
    %50 = arith.subf %43, %49 : vector<16x1xf32>
    %51 = math.exp %50 : vector<16x1xf32>
    %52 = arith.subf %48, %49 : vector<16x1xf32>
    %53 = math.exp %52 : vector<16x1xf32>
    %54 = arith.addf %51, %53 : vector<16x1xf32>
    %55 = tpu.reciprocal %54 {approx = true} : vector<16x1xf32> -> vector<16x1xf32>
    %56 = arith.mulf %51, %55 : vector<16x1xf32>
    %57 = vector.broadcast %56 : vector<16x1xf32> to vector<16x32xf32>
    %58 = arith.mulf %57, %20 : vector<16x32xf32>
    %59 = arith.mulf %53, %55 : vector<16x1xf32>
    %60 = vector.broadcast %59 : vector<16x1xf32> to vector<16x32xf32>
    %61 = arith.mulf %60, %37 : vector<16x32xf32>
    %62 = arith.addf %58, %61 : vector<16x32xf32>
    %c0_27 = arith.constant 0 : index
    %c0_28 = arith.constant 0 : index
    %63 = vector.load %arg9[%c0_27, %c0_28] : memref<16x32xf32, #tpu.memory_space<vmem>>, vector<16x32xf32>
    tpu.vector_store %arg9[%c0_27, %c0_28], %62 {strides = array<i32>} : memref<16x32xf32, #tpu.memory_space<vmem>>, vector<16x32xf32>,
    return
  }
  func.func @transform_0(%arg0: i32) -> (i32, i32) {
    %c0_i32 = arith.constant 0 : i32
    %c0_i32_0 = arith.constant 0 : i32
    return %arg0, %c0_i32 : i32, i32
  }
  func.func @transform_1(%arg0: i32) -> (i32, i32) {
    %c0_i32 = arith.constant 0 : i32
    %c0_i32_0 = arith.constant 0 : i32
    %c0_i32_1 = arith.constant 0 : i32
    return %c0_i32, %c0_i32_0 : i32, i32
  }
  func.func @transform_2(%arg0: i32) -> (i32, i32) {
    %c0_i32 = arith.constant 0 : i32
    %c0_i32_0 = arith.constant 0 : i32
    %c0_i32_1 = arith.constant 0 : i32
    return %c0_i32, %c0_i32_0 : i32, i32
  }
  func.func @transform_3(%arg0: i32) -> (i32, i32) {
    %c0_i32 = arith.constant 0 : i32
    %c0_i32_0 = arith.constant 0 : i32
    %c0_i32_1 = arith.constant 0 : i32
    return %c0_i32, %c0_i32_0 : i32, i32
  }
  func.func @transform_4(%arg0: i32) -> (i32, i32) {
    %c0_i32 = arith.constant 0 : i32
    %c0_i32_0 = arith.constant 0 : i32
    %c0_i32_1 = arith.constant 0 : i32
    return %c0_i32, %c0_i32_0 : i32, i32
  }
  func.func @transform_5(%arg0: i32) -> (i32, i32) {
    %c0_i32 = arith.constant 0 : i32
    %c0_i32_0 = arith.constant 0 : i32
    %c0_i32_1 = arith.constant 0 : i32
    return %c0_i32, %c0_i32_0 : i32, i32
  }
  func.func @transform_6(%arg0: i32) -> (i32, i32) {
    %c0_i32 = arith.constant 0 : i32
    %c0_i32_0 = arith.constant 0 : i32
    %c0_i32_1 = arith.constant 0 : i32
    return %c0_i32, %c0_i32_0 : i32, i32
  }
  func.func @transform_7(%arg0: i32) -> (i32, i32) {
    %c0_i32 = arith.constant 0 : i32
    %c0_i32_0 = arith.constant 0 : i32
    %c0_i32_1 = arith.constant 0 : i32
    return %c0_i32, %c0_i32_0 : i32, i32
  }
  func.func @transform_8(%arg0: i32) -> (i32, i32) {
    %c0_i32 = arith.constant 0 : i32
    %c0_i32_0 = arith.constant 0 : i32
    return %arg0, %c0_i32 : i32, i32
  }
}

</mosaic_0001>

<bundles_post_ra>
// kernel: tpu_custom_call.1
= control target key start
LH: loop header
LB: loop body
LE: loop exit
PB: predicated region body
PF: predicated region fallthrough
CT: control target
= control target key end

     0   :  { %vm43_vm0 = vcmask 261120   ;;  %s903_s0 = inlined_call_operand.vmem [shape: f32[16,32], index: 0, kind: input, shape index: {}]   ;;  %s904_s1 = inlined_call_operand.vmem [shape: f32[32,64], index: 1, kind: input, shape index: {}]   ;;  %s905_s2 = inlined_call_operand.vmem [shape: f32[1,64], index: 2, kind: input, shape index: {}]   ;;  %s906_s3 = inlined_call_operand.vmem [shape: f32[64,24], index: 3, kind: input, shape index: {}]   ;;  %s907_s4 = inlined_call_operand.vmem [shape: f32[24,32], index: 4, kind: input, shape index: {}]   ;;  %s908_s5 = inlined_call_operand.vmem [shape: f32[32,24], index: 5, kind: input, shape index: {}]   ;;  %s909_s6 = inlined_call_operand.vmem [shape: f32[1,24], index: 6, kind: input, shape index: {}]   ;;  %s910_s7 = inlined_call_operand.vmem [shape: f32[2,24], index: 7, kind: input, shape index: {}]   ;;  %s911_s8 = inlined_call_operand.hbm [shape: f32[16,32], index: 8, kind: output, shape index: {}]  }
   0x1   :  { %v35_v0 = vld [vmem:[%s904_s1 + $0x18] sm:$0xff]  ;;  %v34_v1 = vld [vmem:[%s904_s1 + $0x10] sm:$0xff]  ;;  %v801_v2 = vld [vmem:[%s903_s0] sm:$0xff] }
   0x2   :  { %628 = vmatprep.subr.mxu0 %v35_v0  ;;  %v33_v3 = vld [vmem:[%s904_s1 + $0x8] sm:$0xff]  ;;  %636 = vmatprep.mubr.msk.f32.mxu0 %vm43_vm0, %v801_v2 }
   0x3   :  { %629 = vmatpush3.msra.mxu0 %v35_v0 }
   0x4   :  { %13 = vsyncpa [#allocation3], 0  ;;  %630 = vmatprep.subr.mxu0 %v34_v1  ;;  %v32_v4 = vld [vmem:[%s904_s1] sm:$0xff]  ;;  %v814_v5 = vld [vmem:[%s903_s0 + $0x8] sm:$0xff]  ;;  %vm135_vm1 = vcmask 523264   ;;  %vm217_vm2 = vcmask 195584   ;;  %v514_v63 = vlaneseq }
   0x5   :  { %631 = vmatpush3.msra.mxu0 %v34_v1  ;;  %v134_v6 = vld [vmem:[%s906_s3 + $0x38] sm:$0xff]  ;;  %v133_v7 = vld [vmem:[%s906_s3 + $0x30] sm:$0xff]  ;;  %v132_v8 = vld [vmem:[%s906_s3 + $0x28] sm:$0xff] }
   0x6   :  { %632 = vmatprep.subr.mxu0 %v33_v3  ;;  %639 = vmatprep.subr.mxu1 %v134_v6  ;;  %v131_v9 = vld [vmem:[%s906_s3 + $0x20] sm:$0xff]  ;;  %v130_v10 = vld [vmem:[%s906_s3 + $0x18] sm:$0xff]  ;;  %v129_v11 = vld [vmem:[%s906_s3 + $0x10] sm:$0xff]  ;;  %v515_v0 = vshrl.u32 %v514_v63, 7 }
   0x7   :  { %633 = vmatpush3.msra.mxu0 %v33_v3  ;;  %640 = vmatpush3.msra.mxu1 %v134_v6  ;;  %v128_v12 = vld [vmem:[%s906_s3 + $0x8] sm:$0xff]  ;;  %v127_v13 = vld [vmem:[%s906_s3] sm:$0xff]  ;;  %v242_v35 = vld [vmem:[%s907_s4 + $0x10] sm:$0xff] }
   0x8   :  { %634 = vmatprep.subr.mxu0 %v32_v4  ;;  %641 = vmatprep.subr.mxu1 %v133_v7  ;;  %v584_v14 = vld [vmem:[%s905_s2] ss:$0 sm:$0xff]  ;;  %v241_v36 = vld [vmem:[%s907_s4 + $0x8] sm:$0xff]  ;;  %v327_v38 = vld [vmem:[%s908_s5 + $0x18] sm:$0xff]  ;;  %v516_v1 = vsub.s32 0, %v515_v0 }
   0x9   :  { %635 = vmatpush3.msra.mxu0 %v32_v4  ;;  %642 = vmatpush3.msra.mxu1 %v133_v7  ;;  %v240_v37 = vld [vmem:[%s907_s4] sm:$0xff]  ;;  %v326_v45 = vld [vmem:[%s908_s5 + $0x10] sm:$0xff]  ;;  %v325_v46 = vld [vmem:[%s908_s5 + $0x8] sm:$0xff] }
   0xa   :  { %637 = vmatmul.mubr.msk.f32.vlgmr.msra.gmra.mxu0 %vm43_vm0, %v814_v5  ;;  %643 = vmatprep.subr.mxu1 %v132_v8  ;;  %v324_v47 = vld [vmem:[%s908_s5] sm:$0xff] }
   0xb   :  { %644 = vmatpush3.msra.mxu1 %v132_v8  ;;  %658 = vmatprep.subr.mxu0 %v242_v35  ;;  %v591_v50 = vld [vmem:[%s909_s6] ss:$0 sm:$0xff] }
   0xc   :  { %645 = vmatprep.subr.mxu1 %v131_v9  ;;  %659 = vmatpush3.msra.mxu0 %v242_v35 }
   0xd   :  { %646 = vmatpush3.msra.mxu1 %v131_v9  ;;  %660 = vmatprep.subr.mxu0 %v241_v36 }
   0xe   :  { %647 = vmatprep.subr.mxu1 %v130_v10  ;;  %661 = vmatpush3.msra.mxu0 %v241_v36 }
   0xf   :  { %648 = vmatpush3.msra.mxu1 %v130_v10  ;;  %662 = vmatprep.subr.mxu0 %v240_v37 }
  0x10   :  { %649 = vmatprep.subr.mxu1 %v129_v11  ;;  %663 = vmatpush3.msra.mxu0 %v240_v37 }
  0x11   :  { %650 = vmatpush3.msra.mxu1 %v129_v11  ;;  %667 = vmatprep.subr.mxu0 %v327_v38 }
  0x12   :  { %651 = vmatprep.subr.mxu1 %v128_v12 }
  0x13   :  { %652 = vmatpush3.msra.mxu1 %v128_v12 }
  0x14   :  { %653 = vmatprep.subr.mxu1 %v127_v13 }
  0x15   :  { %654 = vmatpush3.msra.mxu1 %v127_v13 }
  0x16   :  { %678 = vmatprep.subr.mxu1 %v242_v35 }
  0xca   :  { %v638_v15 = vpop.f32.mrf.mxu0 }
  0xcb   :  { %v122_v16 = vadd.f32 %v638_v15, %v584_v14 }
  0xcc   :  { %v116_v17 = vpop.f32.mrf.mxu0 }
  0xcd   :  { %v117_v18 = vadd.f32 %v584_v14, %v116_v17  ;;  %v528_v14 = vsub.s32 1, %v515_v0 }
  0xcf   :  { %690 = vtanh.f32 %v117_v18 }
  0xd0   :  { %692 = vtanh.f32 %v122_v16 }
  0xdc   :  { %v691_v19 = vpop.eup %690 }
  0xdd   :  { %v693_v20 = vpop.eup %692  ;;  %655 = vmatprep.mubr.msk.f32.mxu1 %vm135_vm1, %v691_v19 }
  0xde   :  { %656 = vmatmul.mubr.msk.f32.vlgmr.msra.gmra.mxu1 %vm135_vm1, %v693_v20 }
  0xdf   :  { %679 = vmatpush3.msra.mxu1 %v242_v35 }
  0xe0   :  { %680 = vmatprep.subr.mxu1 %v241_v36 }
  0xe1   :  { %681 = vmatpush3.msra.mxu1 %v241_v36 }
  0xe2   :  { %682 = vmatprep.subr.mxu1 %v240_v37 }
  0xe3   :  { %683 = vmatpush3.msra.mxu1 %v240_v37 }
 0x19e   :  { %v657_v21 = vpop.f32.mrf.mxu1 }
 0x19f   :  { %v221_v24 = vsel %vm217_vm2, %v657_v21, -inf }
 0x1a0   :  { %v208_v22 = vpop.f32.mrf.mxu1 }
 0x1a1   :  { %v218_v23 = vsel %vm217_vm2, %v208_v22, -inf }
 0x1a2   :  { %219 = vmax.xlane.f32.xlu0 %v218_v23 }
 0x1a6   :  { %222 = vmax.xlane.f32.xlu0 %v221_v24 }
 0x22b   :  { %v220_v25 = vpop.xlane.xlu0 %219 }
 0x22c   :  { %v224_v26 = vsub.f32 %v208_v22, %v220_v25 }
 0x22e   :  { %v226_v27 = vmul.f32 1.442695, %v224_v26 }
 0x22f   :  { %v223_v28 = vpop.xlane.xlu0 %222 }
 0x230   :  { %694 = vpow2.f32 %v226_v27  ;;  %v225_v29 = vsub.f32 %v657_v21, %v223_v28 }
 0x232   :  { %v228_v30 = vmul.f32 1.442695, %v225_v29 }
 0x234   :  { %696 = vpow2.f32 %v228_v30 }
 0x23d   :  { %v695_v31 = vpop.eup %694 }
 0x23e   :  { %v230_v32 = vsel %vm217_vm2, %v695_v31, 0.0 }
 0x23f   :  { %231 = vadd.xlane.f32.xlu1 %v230_v32 }
 0x241   :  { %v697_v33 = vpop.eup %696 }
 0x242   :  { %v233_v34 = vsel %vm217_vm2, %v697_v33, 0.0 }
 0x243   :  { %234 = vadd.xlane.f32.xlu1 %v233_v34 }
 0x2c8   :  { %v232_v39 = vpop.xlane.xlu1 %231 }
 0x2c9   :  { %698 = vrcp.f32 %v232_v39 }
 0x2cc   :  { %v235_v40 = vpop.xlane.xlu1 %234 }
 0x2cd   :  { %700 = vrcp.f32 %v235_v40 }
 0x2d6   :  { %v699_v41 = vpop.eup %698 }
 0x2d7   :  { %v238_v42 = vmul.f32 %v699_v41, %v695_v31 }
 0x2d9   :  { %664 = vmatprep.mubr.msk.f32.mxu0 %vm217_vm2, %v238_v42 }
 0x2da   :  { %v701_v43 = vpop.eup %700 }
 0x2db   :  { %v239_v44 = vmul.f32 %v701_v43, %v697_v33 }
 0x2dd   :  { %665 = vmatmul.mubr.msk.f32.vlgmr.msra.gmra.mxu0 %vm217_vm2, %v239_v44 }
 0x2de   :  { %668 = vmatpush3.msra.mxu0 %v327_v38  ;;  %675 = vmatprep.mubr.msk.f32.mxu0 %vm43_vm0, %v801_v2  ;;  %v513_v2 = vld [vmem:[%s910_s7] sm:$0x3]  ;;  %s744_s7 = smov [#allocation2]  }
 0x2df   :  { %669 = vmatprep.subr.mxu0 %v326_v45  ;;  %v517_v3 = vrot.slane %v513_v2, %v516_v1  ;;  %v529_v15 = vrot.slane %v513_v2, %v528_v14  ;;  %s573_s22 = sshll.u32 %s744_s7, 4  ;;  %s574_s22 = int_to_ptr.vmem [resolvable:$true] %s573_s22 }
 0x2e0   :  { %670 = vmatpush3.msra.mxu0 %v326_v45  ;;  %s722_s23 = scalar_lea.vmem %s574_s22, 256  ;;  %p727_p1 = scmp.lt.s32.totalorder %s574_s22, %s574_s22 }
 0x2e1   :  { %671 = vmatprep.subr.mxu0 %v325_v46  ;;  %v519_v6 = vmul.f32 %v517_v3, %v239_v44  ;;  %v518_v9 = vmul.f32 %v517_v3, %v238_v42  ;;  %p723_p0 = scmp.ne.s32.totalorder %s574_s22, %s722_s23  ;;  %p728_p2 = scmp.lt.s32.totalorder %s722_s23, %s722_s23 }
 0x2e2   :  { %672 = vmatpush3.msra.mxu0 %v325_v46 }
 0x2e3   :  { %673 = vmatprep.subr.mxu0 %v324_v47  ;;  %v523_v10 = vsel %vm217_vm2, %v519_v6, 0.0  ;;  %v520_v11 = vsel %vm217_vm2, %v518_v9, 0.0  ;;  %p729_p3 = por %p728_p2, %p727_p1 }
 0x2e4   :  { %674 = vmatpush3.msra.mxu0 %v324_v47 }
 0x2e5   :  { %676 = vmatmul.mubr.msk.f32.vlgmr.msra.gmra.mxu0 %vm43_vm0, %v814_v5  ;;  %p730_p4 = pnand %p729_p3, %p723_p0 }
 0x39d   :  { %v876_v48 = vpop.f32.mrf.mxu0 }
 0x39f   :  { %v878_v49 = vpop.f32.mrf.mxu0 }
 0x3a5   :  { %v677_v51 = vpop.f32.mrf.mxu0 }
 0x3a6   :  { %v407_v52 = vadd.f32 %v677_v51, %v591_v50 }
 0x3a7   :  { %v401_v53 = vpop.f32.mrf.mxu0 }
 0x3a8   :  { %v402_v54 = vadd.f32 %v591_v50, %v401_v53  ;;  %v413_v55 = vsel %vm217_vm2, %v407_v52, -inf }
 0x3a9   :  { %414 = vmax.xlane.f32.xlu1 %v413_v55 }
 0x3aa   :  { %v410_v56 = vsel %vm217_vm2, %v402_v54, -inf }
 0x3ab   :  { %411 = vmax.xlane.f32.xlu0 %v410_v56 }
 0x432   :  { %v415_v57 = vpop.xlane.xlu1 %414 }
 0x433   :  { %v417_v58 = vsub.f32 %v407_v52, %v415_v57 }
 0x434   :  { %v412_v59 = vpop.xlane.xlu0 %411 }
 0x435   :  { %v420_v60 = vmul.f32 1.442695, %v417_v58  ;;  %v416_v61 = vsub.f32 %v402_v54, %v412_v59 }
 0x437   :  { %702 = vpow2.f32 %v420_v60  ;;  %v418_v62 = vmul.f32 1.442695, %v416_v61 }
 0x439   :  { %704 = vpow2.f32 %v418_v62 }
 0x444   :  { %v703_v4 = vpop.eup %702 }
 0x445   :  { %v425_v5 = vsel %vm217_vm2, %v703_v4, 0.0 }
 0x446   :  { %v705_v7 = vpop.eup %704  ;;  %426 = vadd.xlane.f32.xlu1 %v425_v5 }
 0x447   :  { %v422_v8 = vsel %vm217_vm2, %v705_v7, 0.0 }
 0x448   :  { %423 = vadd.xlane.f32.xlu0 %v422_v8 }
 0x44a   :  { %524 = vadd.xlane.f32.xlu1 %v523_v10 }
 0x44c   :  { %521 = vadd.xlane.f32.xlu0 %v520_v11 }
 0x4cf   :  { %v427_v12 = vpop.xlane.xlu1 %426 }
 0x4d0   :  { %706 = vrcp.f32 %v427_v12 }
 0x4d1   :  { %v424_v13 = vpop.xlane.xlu0 %423 }
 0x4d2   :  { %708 = vrcp.f32 %v424_v13 }
 0x4d3   :  { %v525_v24 = vpop.xlane.xlu1 %524 }
 0x4d5   :  { %v522_v25 = vpop.xlane.xlu0 %521 }
 0x4dd   :  { %v707_v16 = vpop.eup %706 }
 0x4de   :  { %v431_v17 = vmul.f32 %v707_v16, %v703_v4 }
 0x4df   :  { %v709_v18 = vpop.eup %708 }
 0x4e0   :  { %v430_v19 = vmul.f32 %v709_v18, %v705_v7  ;;  %v531_v20 = vmul.f32 %v529_v15, %v431_v17 }
 0x4e2   :  { %684 = vmatprep.mubr.msk.f32.mxu1 %vm217_vm2, %v430_v19  ;;  %v535_v21 = vsel %vm217_vm2, %v531_v20, 0.0  ;;  %v530_v22 = vmul.f32 %v529_v15, %v430_v19 }
 0x4e3   :  { %536 = vadd.xlane.f32.xlu1 %v535_v21  ;;  %685 = vmatmul.mubr.msk.f32.vlgmr.msra.gmra.mxu1 %vm217_vm2, %v431_v17 }
 0x4e4   :  { %v532_v23 = vsel %vm217_vm2, %v530_v22, 0.0 }
 0x4e5   :  { %533 = vadd.xlane.f32.xlu0 %v532_v23 }
 0x56c   :  { %v537_v26 = vpop.xlane.xlu1 %536 }
 0x56d   :  { %v539_v28 = vmax.f32 %v525_v24, %v537_v26 }
 0x56e   :  { %v534_v27 = vpop.xlane.xlu0 %533 }
 0x56f   :  { %v538_v29 = vmax.f32 %v522_v25, %v534_v27  ;;  %v541_v30 = vsub.f32 %v525_v24, %v539_v28  ;;  %v547_v31 = vsub.f32 %v537_v26, %v539_v28 }
 0x571   :  { %v540_v32 = vsub.f32 %v522_v25, %v538_v29  ;;  %v546_v33 = vsub.f32 %v534_v27, %v538_v29  ;;  %v544_v34 = vmul.f32 1.442695, %v541_v30  ;;  %v550_v35 = vmul.f32 1.442695, %v547_v31 }
 0x573   :  { %v542_v36 = vmul.f32 1.442695, %v540_v32  ;;  %v548_v37 = vmul.f32 1.442695, %v546_v33  ;;  %710 = vpow2.f32 %v544_v34 }
 0x574   :  { %712 = vpow2.f32 %v550_v35 }
 0x575   :  { %714 = vpow2.f32 %v542_v36 }
 0x576   :  { %716 = vpow2.f32 %v548_v37 }
 0x580   :  { %v711_v38 = vpop.eup %710 }
 0x581   :  { %v713_v39 = vpop.eup %712 }
 0x582   :  { %v715_v40 = vpop.eup %714  ;;  %v553_v42 = vadd.f32 %v713_v39, %v711_v38 }
 0x583   :  { %v717_v41 = vpop.eup %716 }
 0x584   :  { %v552_v43 = vadd.f32 %v717_v41, %v715_v40  ;;  %718 = vrcp.f32 %v553_v42 }
 0x586   :  { %720 = vrcp.f32 %v552_v43 }
 0x591   :  { %v719_v44 = vpop.eup %718 }
 0x592   :  { %v557_v46 = vmul.f32 %v719_v44, %v711_v38  ;;  %v561_v47 = vmul.f32 %v719_v44, %v713_v39 }
 0x593   :  { %v721_v45 = vpop.eup %720 }
 0x594   :  { %v556_v50 = vmul.f32 %v721_v45, %v715_v40  ;;  %v559_v52 = vmul.f32 %v876_v48, %v557_v46  ;;  %v560_v54 = vmul.f32 %v721_v45, %v717_v41 }
 0x596   :  { %v558_v57 = vmul.f32 %v556_v50, %v878_v49 }
 0x5a3   :  { %v686_v51 = vpop.f32.mrf.mxu1 }
 0x5a4   :  { %v563_v53 = vmul.f32 %v686_v51, %v561_v47 }
 0x5a5   :  { %v504_v55 = vpop.f32.mrf.mxu1 }
 0x5a6   :  { %v565_v56 = vadd.f32 %v563_v53, %v559_v52  ;;  %v562_v58 = vmul.f32 %v560_v54, %v504_v55 }
 0x5a8   :  { %567 = vst.msk [vmem:[#allocation2 + $0x8] sm:$0xff] %vm43_vm0, %v565_v56  ;;  %v564_v59 = vadd.f32 %v562_v58, %v558_v57 }
 0x5aa   :  { %566 = vst.msk [vmem:[#allocation2] sm:$0xff] %vm43_vm0, %v564_v59 }
 0x5ab   :  { %733 = shalt.err (!%p730_p4)
}
 0x5ac   :  { %s745_s24 = smov 128   ;;  %s746_s25 = smov 8  }
 0x5ad   :  { %579 = dma.vmem_to_hbm [thread:$0]  %s574_s22, 256, %s911_s8, [#allocation3], %s745_s24, %s745_s24, %s746_s25  }
 0x5ae   :  { %742 = dma.done.wait [#allocation3], 256  }
 0x5af   :  { %743 = vsyncadd [#allocation3], 4294967040 }
 0x5b0   :  { %583 = vsyncpa [#allocation3], 1 }

</bundles_post_ra>
